<compile_context>
chip_gen: v6e
topology: v6e:2x2x1
jax: 0.10.0
libtpu: 0.0.40
codegen_flags: <defaults>
</compile_context>

<pallas_src>
import math

import jax
import jax.numpy as jnp
from jax.experimental import pallas as pl
from jax.experimental.pallas import tpu as pltpu


def make_mhsa_kernel(T, E, H, Bt):
    Dh = E // H
    assert E % H == 0
    # query @ key.transpose(-2,-1) with key already (B,H,Dh,T) requires T == Dh.
    assert T == Dh, "CustomMultiHeadSelfAttention only runs when seq_len == head_dim"
    BT = Bt * T            # rows per step with batch folded in
    G = Bt * H             # (batch, head) pages, b-major
    inv_sqrt_dh = 1.0 / math.sqrt(Dh)

    def kernel(x_ref, wqkv_ref, bqkv_ref, wproj_ref, bproj_ref, o_ref, ybuf_ref):
        # ---- fused c_attn: one (Bt*T, E) @ (E, 3E) MXU matmul ----------------------
        # (Bt, T, E) -> (Bt*T, E) is layout-preserving (T == 8 == sublane tile).
        x2 = x_ref[...].reshape(BT, E)
        qkv = jnp.dot(x2, wqkv_ref[...],
                      preferred_element_type=jnp.float32) + bqkv_ref[...]   # (BT, 3E)

        # ---- head split: static lane slices, leading-dim stacks only ---------------
        def split_heads(col0):
            parts = [qkv[:, col0 + h * Dh: col0 + (h + 1) * Dh].reshape(Bt, T, Dh)
                     for h in range(H)]
            # stack over a *leading* axis then merge leading dims -> (G, T, Dh), b-major
            return jnp.stack(parts, axis=1).reshape(G, T, Dh)

        q3 = split_heads(0)
        k3 = split_heads(E)
        v3 = split_heads(2 * E)

        # ---- scores: s[g,i,j] = sum_c q[g,i,c] * k[g,c,j]  (module's exact quirk) --
        s = jnp.einsum('gic,gcj->gij', q3, k3,
                       preferred_element_type=jnp.float32) * inv_sqrt_dh
        s = s - jnp.max(s, axis=-1, keepdims=True)
        ex = jnp.exp(s)
        p = ex / jnp.sum(ex, axis=-1, keepdims=True)          # exact divide
        # TODO(synk): attn_dropout(p=0.1) omitted (inference mode, no in-kernel RNG).
        y = jnp.einsum('gij,gjd->gid', p, v3,
                       preferred_element_type=jnp.float32)    # (G, T, Dh)

        # ---- merge_heads (raw view) fused with c_proj ------------------------------
        # The flat buffer of y (b-major (b,h,t,d) order) IS the module's merged view.
        # (G, T, Dh) -> (G*T, Dh) is layout-preserving; ONE aligned store.
        ybuf_ref[...] = y.reshape(G * T, Dh)
        # merged[r, g*Dh + d] = ybuf[H*r + g, d]  =>
        #   out = sum_g  ybuf[g::H, :] @ WprojT[g*Dh:(g+1)*Dh, :]  (+ bias)
        acc = jnp.dot(ybuf_ref[pl.ds(0, BT, stride=H), :], wproj_ref[0:Dh, :],
                      preferred_element_type=jnp.float32)
        for grp in range(1, H):
            acc = acc + jnp.dot(ybuf_ref[pl.ds(grp, BT, stride=H), :],
                                wproj_ref[grp * Dh:(grp + 1) * Dh, :],
                                preferred_element_type=jnp.float32)
        # TODO(synk): resid_dropout(p=0.1) omitted (inference mode).
        o_ref[...] = (acc + bproj_ref[...]).reshape(Bt, T, E)

    return kernel


def mhsa_forward(x, w_attn, b_attn, w_proj, b_proj, heads, *, batch_block=None):
    """x: (B, T, E); weights follow nn.Linear convention (out_features, in_features).

    batch_block: batch rows processed per grid step.  Default = B (one grid step,
    best on single-TensorCore chips: v5e/v6e).  On v7x pass batch_block=B//2 so the
    "parallel" grid axis keeps both TensorCores busy.
    """
    B, T, E = x.shape
    H = heads
    Bt = B if batch_block is None else batch_block
    assert B % Bt == 0
    kernel = make_mhsa_kernel(T, E, H, Bt)

    # ---- host-side (free) weight re-layout: natural layouts only ----
    wqkv_t = jnp.transpose(w_attn)              # (E, 3E): x @ wqkv_t = c_attn pre-bias
    bqkv = b_attn.reshape(1, 3 * E)
    wproj_t = jnp.transpose(w_proj)             # (E, E):  merged @ wproj_t = c_proj pre-bias
    bproj = b_proj.reshape(1, E)

    fullw = lambda i: (0, 0)
    grid_spec = pltpu.PrefetchScalarGridSpec(
        num_scalar_prefetch=0,
        grid=(B // Bt,),
        in_specs=[
            pl.BlockSpec((Bt, T, E), lambda i: (i, 0, 0)),   # x, Bt batch rows per step
            pl.BlockSpec((E, 3 * E), fullw),                 # Wqkv^T (fused c_attn weight)
            pl.BlockSpec((1, 3 * E), fullw),                 # b_attn
            pl.BlockSpec((E, E), fullw),                     # Wproj^T
            pl.BlockSpec((1, E), fullw),                     # b_proj
        ],
        out_specs=pl.BlockSpec((Bt, T, E), lambda i: (i, 0, 0)),
        scratch_shapes=[pltpu.VMEM((Bt * H * T, E // H), jnp.float32)],  # flat y == merged view
    )
    return pl.pallas_call(
        kernel,
        out_shape=jax.ShapeDtypeStruct((B, T, E), jnp.float32),
        grid_spec=grid_spec,
        compiler_params=pltpu.CompilerParams(dimension_semantics=("parallel",)),
    )(x, wqkv_t, bqkv, wproj_t, bproj)


def ref_forward(x, w_attn, b_attn, w_proj, b_proj, heads):
    """Pure-JAX mirror of the PyTorch forward (dropout = identity)."""
    B, T, E = x.shape
    H = heads
    Dh = E // H
    qkv = x @ w_attn.T + b_attn
    q, k, v = jnp.split(qkv, 3, axis=2)

    def split_heads(t, is_key=False):
        t = t.reshape(B, T, H, Dh)
        return t.transpose(0, 2, 3, 1) if is_key else t.transpose(0, 2, 1, 3)

    qh = split_heads(q)                 # (B, H, T, Dh)
    kh = split_heads(k, is_key=True)    # (B, H, Dh, T)
    vh = split_heads(v)                 # (B, H, T, Dh)
    a = jnp.matmul(qh, jnp.swapaxes(kh, -2, -1)) / (Dh ** 0.5)
    a = a - jnp.max(a, axis=-1, keepdims=True)
    e = jnp.exp(a)
    a = e / jnp.sum(e, axis=-1, keepdims=True)
    y = jnp.matmul(a, vh)               # (B, H, T, Dh)
    y = y.reshape(B, T, H * Dh)         # the module's raw .view merge
    return y @ w_proj.T + b_proj


if __name__ == "__main__":
    # embed_size=32, heads=4 -> head_dim=8 ; the module requires seq_len == head_dim.
    B, T, E, H = 2, 8, 32, 4

    key = jax.random.PRNGKey(0)
    kx, k1, k2, k3, k4 = jax.random.split(key, 5)
    bound = 1.0 / math.sqrt(E)
    x = jax.random.normal(kx, (B, T, E), dtype=jnp.float32)
    w_attn = jax.random.uniform(k1, (3 * E, E), jnp.float32, -bound, bound)
    b_attn = jax.random.uniform(k2, (3 * E,), jnp.float32, -bound, bound)
    w_proj = jax.random.uniform(k3, (E, E), jnp.float32, -bound, bound)
    b_proj = jax.random.uniform(k4, (E,), jnp.float32, -bound, bound)

    out = mhsa_forward(x, w_attn, b_attn, w_proj, b_proj, H)
    out = jax.block_until_ready(out)

    ref = ref_forward(x, w_attn, b_attn, w_proj, b_proj, H)
    assert out.shape == (B, T, E)
    max_err = float(jnp.max(jnp.abs(out - ref)))
    # Exact softmax divide + f32 everywhere: expected agreement ~1e-6; assert with margin.
    assert max_err < 1e-4, f"mismatch vs reference: {max_err}"
    print("KERNEL_OK")
</pallas_src>

<mosaic_0001>
module attributes {stable_mosaic.version = 11 : i64} {
  func.func @kernel(%arg0: i32, %arg1: memref<2x8x32xf32, #tpu.memory_space<vmem>>, %arg2: memref<32x96xf32, #tpu.memory_space<vmem>>, %arg3: memref<1x96xf32, #tpu.memory_space<vmem>>, %arg4: memref<32x32xf32, #tpu.memory_space<vmem>>, %arg5: memref<1x32xf32, #tpu.memory_space<vmem>>, %arg6: memref<2x8x32xf32, #tpu.memory_space<vmem>>, %arg7: memref<64x8xf32, #tpu.memory_space<vmem>>) attributes {dimension_semantics = [#tpu.dimension_semantics<parallel>], iteration_bounds = array<i64: 1>, scalar_prefetch = 0 : i64, scratch_operands = 1 : i64, tpu.core_type = #tpu.core_type<tc>, window_params = [{transform_indices = @transform_0, window_bounds = array<i64: 2, 8, 32>}, {pipeline_mode = #tpu.pipeline_mode<synchronous>, transform_indices = @transform_1, window_bounds = array<i64: 32, 96>}, {pipeline_mode = #tpu.pipeline_mode<synchronous>, transform_indices = @transform_2, window_bounds = array<i64: 1, 96>}, {pipeline_mode = #tpu.pipeline_mode<synchronous>, transform_indices = @transform_3, window_bounds = array<i64: 32, 32>}, {pipeline_mode = #tpu.pipeline_mode<synchronous>, transform_indices = @transform_4, window_bounds = array<i64: 1, 32>}, {transform_indices = @transform_5, window_bounds = array<i64: 2, 8, 32>}]} {
    %c0 = arith.constant 0 : index
    %c0_0 = arith.constant 0 : index
    %c0_1 = arith.constant 0 : index
    %0 = vector.load %arg1[%c0, %c0_0, %c0_1] : memref<2x8x32xf32, #tpu.memory_space<vmem>>, vector<2x8x32xf32>
    %1 = vector.shape_cast %0 : vector<2x8x32xf32> to vector<16x32xf32>
    %c0_2 = arith.constant 0 : index
    %c0_3 = arith.constant 0 : index
    %2 = vector.load %arg2[%c0_2, %c0_3] : memref<32x96xf32, #tpu.memory_space<vmem>>, vector<32x96xf32>
    %cst = arith.constant dense<0.000000e+00> : vector<16x96xf32>
    %3 = tpu.matmul %1, %2, %cst {dimension_numbers = #tpu.dot_dimension_numbers<[1], [0], [0], [1], [0, 0, 1, 1], [], []>} : vector<16x32xf32>, vector<32x96xf32>, vector<16x96xf32> -> vector<16x96xf32>
    %c0_4 = arith.constant 0 : index
    %c0_5 = arith.constant 0 : index
    %4 = vector.load %arg3[%c0_4, %c0_5] : memref<1x96xf32, #tpu.memory_space<vmem>>, vector<1x96xf32>
    %5 = vector.broadcast %4 : vector<1x96xf32> to vector<16x96xf32>
    %6 = arith.addf %3, %5 : vector<16x96xf32>
    %7 = vector.extract_strided_slice %6 {offsets = [0, 0], sizes = [16, 8], strides = [1, 1]} : vector<16x96xf32> to vector<16x8xf32>
    %8 = vector.shape_cast %7 : vector<16x8xf32> to vector<2x8x8xf32>
    %9 = vector.extract_strided_slice %6 {offsets = [0, 8], sizes = [16, 8], strides = [1, 1]} : vector<16x96xf32> to vector<16x8xf32>
    %10 = vector.shape_cast %9 : vector<16x8xf32> to vector<2x8x8xf32>
    %11 = vector.extract_strided_slice %6 {offsets = [0, 16], sizes = [16, 8], strides = [1, 1]} : vector<16x96xf32> to vector<16x8xf32>
    %12 = vector.shape_cast %11 : vector<16x8xf32> to vector<2x8x8xf32>
    %13 = vector.extract_strided_slice %6 {offsets = [0, 24], sizes = [16, 8], strides = [1, 1]} : vector<16x96xf32> to vector<16x8xf32>
    %14 = vector.shape_cast %13 : vector<16x8xf32> to vector<2x8x8xf32>
    %15 = vector.shape_cast %8 : vector<2x8x8xf32> to vector<2x1x8x8xf32>
    %16 = vector.shape_cast %10 : vector<2x8x8xf32> to vector<2x1x8x8xf32>
    %17 = vector.shape_cast %12 : vector<2x8x8xf32> to vector<2x1x8x8xf32>
    %18 = vector.shape_cast %14 : vector<2x8x8xf32> to vector<2x1x8x8xf32>
    %19 = tpu.concatenate %15, %16, %17, %18 in 1 : vector<2x1x8x8xf32>, vector<2x1x8x8xf32>, vector<2x1x8x8xf32>, vector<2x1x8x8xf32> -> vector<2x4x8x8xf32>
    %20 = vector.shape_cast %19 : vector<2x4x8x8xf32> to vector<8x8x8xf32>
    %21 = vector.extract_strided_slice %6 {offsets = [0, 32], sizes = [16, 8], strides = [1, 1]} : vector<16x96xf32> to vector<16x8xf32>
    %22 = vector.shape_cast %21 : vector<16x8xf32> to vector<2x8x8xf32>
    %23 = vector.extract_strided_slice %6 {offsets = [0, 40], sizes = [16, 8], strides = [1, 1]} : vector<16x96xf32> to vector<16x8xf32>
    %24 = vector.shape_cast %23 : vector<16x8xf32> to vector<2x8x8xf32>
    %25 = vector.extract_strided_slice %6 {offsets = [0, 48], sizes = [16, 8], strides = [1, 1]} : vector<16x96xf32> to vector<16x8xf32>
    %26 = vector.shape_cast %25 : vector<16x8xf32> to vector<2x8x8xf32>
    %27 = vector.extract_strided_slice %6 {offsets = [0, 56], sizes = [16, 8], strides = [1, 1]} : vector<16x96xf32> to vector<16x8xf32>
    %28 = vector.shape_cast %27 : vector<16x8xf32> to vector<2x8x8xf32>
    %29 = vector.shape_cast %22 : vector<2x8x8xf32> to vector<2x1x8x8xf32>
    %30 = vector.shape_cast %24 : vector<2x8x8xf32> to vector<2x1x8x8xf32>
    %31 = vector.shape_cast %26 : vector<2x8x8xf32> to vector<2x1x8x8xf32>
    %32 = vector.shape_cast %28 : vector<2x8x8xf32> to vector<2x1x8x8xf32>
    %33 = tpu.concatenate %29, %30, %31, %32 in 1 : vector<2x1x8x8xf32>, vector<2x1x8x8xf32>, vector<2x1x8x8xf32>, vector<2x1x8x8xf32> -> vector<2x4x8x8xf32>
    %34 = vector.shape_cast %33 : vector<2x4x8x8xf32> to vector<8x8x8xf32>
    %35 = vector.extract_strided_slice %6 {offsets = [0, 64], sizes = [16, 8], strides = [1, 1]} : vector<16x96xf32> to vector<16x8xf32>
    %36 = vector.shape_cast %35 : vector<16x8xf32> to vector<2x8x8xf32>
    %37 = vector.extract_strided_slice %6 {offsets = [0, 72], sizes = [16, 8], strides = [1, 1]} : vector<16x96xf32> to vector<16x8xf32>
    %38 = vector.shape_cast %37 : vector<16x8xf32> to vector<2x8x8xf32>
    %39 = vector.extract_strided_slice %6 {offsets = [0, 80], sizes = [16, 8], strides = [1, 1]} : vector<16x96xf32> to vector<16x8xf32>
    %40 = vector.shape_cast %39 : vector<16x8xf32> to vector<2x8x8xf32>
    %41 = vector.extract_strided_slice %6 {offsets = [0, 88], sizes = [16, 8], strides = [1, 1]} : vector<16x96xf32> to vector<16x8xf32>
    %42 = vector.shape_cast %41 : vector<16x8xf32> to vector<2x8x8xf32>
    %43 = vector.shape_cast %36 : vector<2x8x8xf32> to vector<2x1x8x8xf32>
    %44 = vector.shape_cast %38 : vector<2x8x8xf32> to vector<2x1x8x8xf32>
    %45 = vector.shape_cast %40 : vector<2x8x8xf32> to vector<2x1x8x8xf32>
    %46 = vector.shape_cast %42 : vector<2x8x8xf32> to vector<2x1x8x8xf32>
    %47 = tpu.concatenate %43, %44, %45, %46 in 1 : vector<2x1x8x8xf32>, vector<2x1x8x8xf32>, vector<2x1x8x8xf32>, vector<2x1x8x8xf32> -> vector<2x4x8x8xf32>
    %48 = vector.shape_cast %47 : vector<2x4x8x8xf32> to vector<8x8x8xf32>
    "tpu.trace_start"() <{level = 10 : i32, message = "gic,gcj->gij"}> : () -> ()
    %cst_6 = arith.constant dense<0.000000e+00> : vector<8x8x8xf32>
    %49 = tpu.matmul %20, %34, %cst_6 {dimension_numbers = #tpu.dot_dimension_numbers<[2], [1], [1], [2], [0, 0, 0, 1, 1, 2], [0], [0]>} : vector<8x8x8xf32>, vector<8x8x8xf32>, vector<8x8x8xf32> -> vector<8x8x8xf32>
    "tpu.trace_stop"() : () -> ()
    %cst_7 = arith.constant 0.353553385 : f32
    %50 = vector.broadcast %cst_7 : f32 to vector<8x8x8xf32>
    %51 = arith.mulf %49, %50 : vector<8x8x8xf32>
    %cst_8 = arith.constant dense<0xFF800000> : vector<8x8xf32>
    %52 = vector.multi_reduction <maximumf>, %51, %cst_8 [2] : vector<8x8x8xf32> to vector<8x8xf32>
    %53 = vector.shape_cast %52 : vector<8x8xf32> to vector<8x8x1xf32>
    %54 = vector.broadcast %53 : vector<8x8x1xf32> to vector<8x8x8xf32>
    %55 = arith.subf %51, %54 : vector<8x8x8xf32>
    %56 = math.exp %55 : vector<8x8x8xf32>
    %cst_9 = arith.constant dense<0.000000e+00> : vector<8x8xf32>
    %57 = vector.multi_reduction <add>, %56, %cst_9 [2] : vector<8x8x8xf32> to vector<8x8xf32>
    %58 = vector.shape_cast %57 : vector<8x8xf32> to vector<8x8x1xf32>
    %59 = vector.broadcast %58 : vector<8x8x1xf32> to vector<8x8x8xf32>
    %60 = arith.divf %56, %59 : vector<8x8x8xf32>
    "tpu.trace_start"() <{level = 10 : i32, message = "gij,gjd->gid"}> : () -> ()
    %cst_10 = arith.constant dense<0.000000e+00> : vector<8x8x8xf32>
    %61 = tpu.matmul %60, %48, %cst_10 {dimension_numbers = #tpu.dot_dimension_numbers<[2], [1], [1], [2], [0, 0, 0, 1, 1, 2], [0], [0]>} : vector<8x8x8xf32>, vector<8x8x8xf32>, vector<8x8x8xf32> -> vector<8x8x8xf32>
    "tpu.trace_stop"() : () -> ()
    %62 = vector.shape_cast %61 : vector<8x8x8xf32> to vector<64x8xf32>
    %c0_11 = arith.constant 0 : index
    %c0_12 = arith.constant 0 : index
    %63 = vector.load %arg7[%c0_11, %c0_12] : memref<64x8xf32, #tpu.memory_space<vmem>>, vector<64x8xf32>
    tpu.vector_store %arg7[%c0_11, %c0_12], %62 {strides = array<i32>} : memref<64x8xf32, #tpu.memory_space<vmem>>, vector<64x8xf32>,
    %c0_13 = arith.constant 0 : index
    %c0_14 = arith.constant 0 : index
    %64 = tpu.strided_load %arg7[%c0_13, %c0_14] {strides = array<i32: 4, 1>} : memref<64x8xf32, #tpu.memory_space<vmem>>, vector<16x8xf32>
    %c0_15 = arith.constant 0 : index
    %c0_16 = arith.constant 0 : index
    %65 = vector.load %arg4[%c0_15, %c0_16] : memref<32x32xf32, #tpu.memory_space<vmem>>, vector<8x32xf32>
    %cst_17 = arith.constant dense<0.000000e+00> : vector<16x32xf32>
    %66 = tpu.matmul %64, %65, %cst_17 {dimension_numbers = #tpu.dot_dimension_numbers<[1], [0], [0], [1], [0, 0, 1, 1], [], []>} : vector<16x8xf32>, vector<8x32xf32>, vector<16x32xf32> -> vector<16x32xf32>
    %c1 = arith.constant 1 : index
    %c0_18 = arith.constant 0 : index
    %67 = tpu.strided_load %arg7[%c1, %c0_18] {strides = array<i32: 4, 1>} : memref<64x8xf32, #tpu.memory_space<vmem>>, vector<16x8xf32>
    %c8 = arith.constant 8 : index
    %c0_19 = arith.constant 0 : index
    %68 = vector.load %arg4[%c8, %c0_19] : memref<32x32xf32, #tpu.memory_space<vmem>>, vector<8x32xf32>
    %cst_20 = arith.constant dense<0.000000e+00> : vector<16x32xf32>
    %69 = tpu.matmul %67, %68, %cst_20 {dimension_numbers = #tpu.dot_dimension_numbers<[1], [0], [0], [1], [0, 0, 1, 1], [], []>} : vector<16x8xf32>, vector<8x32xf32>, vector<16x32xf32> -> vector<16x32xf32>
    %70 = arith.addf %66, %69 : vector<16x32xf32>
    %c2 = arith.constant 2 : index
    %c0_21 = arith.constant 0 : index
    %71 = tpu.strided_load %arg7[%c2, %c0_21] {strides = array<i32: 4, 1>} : memref<64x8xf32, #tpu.memory_space<vmem>>, vector<16x8xf32>
    %c16 = arith.constant 16 : index
    %c0_22 = arith.constant 0 : index
    %72 = vector.load %arg4[%c16, %c0_22] : memref<32x32xf32, #tpu.memory_space<vmem>>, vector<8x32xf32>
    %cst_23 = arith.constant dense<0.000000e+00> : vector<16x32xf32>
    %73 = tpu.matmul %71, %72, %cst_23 {dimension_numbers = #tpu.dot_dimension_numbers<[1], [0], [0], [1], [0, 0, 1, 1], [], []>} : vector<16x8xf32>, vector<8x32xf32>, vector<16x32xf32> -> vector<16x32xf32>
    %74 = arith.addf %70, %73 : vector<16x32xf32>
    %c3 = arith.constant 3 : index
    %c0_24 = arith.constant 0 : index
    %75 = tpu.strided_load %arg7[%c3, %c0_24] {strides = array<i32: 4, 1>} : memref<64x8xf32, #tpu.memory_space<vmem>>, vector<16x8xf32>
    %c24 = arith.constant 24 : index
    %c0_25 = arith.constant 0 : index
    %76 = vector.load %arg4[%c24, %c0_25] : memref<32x32xf32, #tpu.memory_space<vmem>>, vector<8x32xf32>
    %cst_26 = arith.constant dense<0.000000e+00> : vector<16x32xf32>
    %77 = tpu.matmul %75, %76, %cst_26 {dimension_numbers = #tpu.dot_dimension_numbers<[1], [0], [0], [1], [0, 0, 1, 1], [], []>} : vector<16x8xf32>, vector<8x32xf32>, vector<16x32xf32> -> vector<16x32xf32>
    %78 = arith.addf %74, %77 : vector<16x32xf32>
    %c0_27 = arith.constant 0 : index
    %c0_28 = arith.constant 0 : index
    %79 = vector.load %arg5[%c0_27, %c0_28] : memref<1x32xf32, #tpu.memory_space<vmem>>, vector<1x32xf32>
    %80 = vector.broadcast %79 : vector<1x32xf32> to vector<16x32xf32>
    %81 = arith.addf %78, %80 : vector<16x32xf32>
    %82 = vector.shape_cast %81 : vector<16x32xf32> to vector<2x8x32xf32>
    %c0_29 = arith.constant 0 : index
    %c0_30 = arith.constant 0 : index
    %c0_31 = arith.constant 0 : index
    %83 = vector.load %arg6[%c0_29, %c0_30, %c0_31] : memref<2x8x32xf32, #tpu.memory_space<vmem>>, vector<2x8x32xf32>
    tpu.vector_store %arg6[%c0_29, %c0_30, %c0_31], %82 {strides = array<i32>} : memref<2x8x32xf32, #tpu.memory_space<vmem>>, vector<2x8x32xf32>,
    return
  }
  func.func @transform_0(%arg0: i32) -> (i32, i32, i32) {
    %c0_i32 = arith.constant 0 : i32
    %c0_i32_0 = arith.constant 0 : i32
    %c0_i32_1 = arith.constant 0 : i32
    return %arg0, %c0_i32, %c0_i32_0 : i32, i32, i32
  }
  func.func @transform_1(%arg0: i32) -> (i32, i32) {
    %c0_i32 = arith.constant 0 : i32
    %c0_i32_0 = arith.constant 0 : i32
    %c0_i32_1 = arith.constant 0 : i32
    return %c0_i32, %c0_i32_0 : i32, i32
  }
  func.func @transform_2(%arg0: i32) -> (i32, i32) {
    %c0_i32 = arith.constant 0 : i32
    %c0_i32_0 = arith.constant 0 : i32
    %c0_i32_1 = arith.constant 0 : i32
    return %c0_i32, %c0_i32_0 : i32, i32
  }
  func.func @transform_3(%arg0: i32) -> (i32, i32) {
    %c0_i32 = arith.constant 0 : i32
    %c0_i32_0 = arith.constant 0 : i32
    %c0_i32_1 = arith.constant 0 : i32
    return %c0_i32, %c0_i32_0 : i32, i32
  }
  func.func @transform_4(%arg0: i32) -> (i32, i32) {
    %c0_i32 = arith.constant 0 : i32
    %c0_i32_0 = arith.constant 0 : i32
    %c0_i32_1 = arith.constant 0 : i32
    return %c0_i32, %c0_i32_0 : i32, i32
  }
  func.func @transform_5(%arg0: i32) -> (i32, i32, i32) {
    %c0_i32 = arith.constant 0 : i32
    %c0_i32_0 = arith.constant 0 : i32
    %c0_i32_1 = arith.constant 0 : i32
    return %arg0, %c0_i32, %c0_i32_0 : i32, i32, i32
  }
}

</mosaic_0001>

<bundles_post_ra>
// kernel: tpu_custom_call.1
= control target key start
LH: loop header
LB: loop body
LE: loop exit
PB: predicated region body
PF: predicated region fallthrough
CT: control target
= control target key end

     0   :  { %10 = vsyncpa [#allocation4], 0  ;;  %s2419_s0 = inlined_call_operand.hbm [shape: f32[2,8,32], index: 0, kind: input, shape index: {}]   ;;  %s2420_s1 = inlined_call_operand.hbm [shape: f32[32,96], index: 1, kind: input, shape index: {}]   ;;  %s2421_s2 = inlined_call_operand.vmem [shape: f32[1,96], index: 2, kind: input, shape index: {}]   ;;  %s2422_s3 = inlined_call_operand.hbm [shape: f32[32,32], index: 3, kind: input, shape index: {}]   ;;  %s2423_s4 = inlined_call_operand.vmem [shape: f32[1,32], index: 4, kind: input, shape index: {}]   ;;  %s2424_s5 = inlined_call_operand.hbm [shape: f32[2,8,32], index: 5, kind: output, shape index: {}]  }
   0x1   :  { %11 = vsyncpa [#allocation7], 0 }
   0x2   :  { %12 = vsyncpa [#allocation5], 0  ;;  %s2180_s18 = smov [#allocation6]   ;;  %s2181_s20 = smov [#allocation3]  }
   0x3   :  { %s30_s19 = sshll.u32 %s2180_s18, 4  ;;  %s18_s21 = sshll.u32 %s2181_s20, 4  ;;  %s31_s19 = int_to_ptr.vmem [resolvable:$true] %s30_s19  ;;  %s19_s21 = int_to_ptr.vmem [resolvable:$true] %s18_s21 }
   0x4   :  { %s2102_s22 = scalar_lea.vmem %s31_s19, 512  ;;  %p2107_p1 = scmp.lt.s32.totalorder %s31_s19, %s31_s19 }
   0x5   :  { %p2103_p0 = scmp.ne.s32.totalorder %s31_s19, %s2102_s22  ;;  %p2108_p2 = scmp.lt.s32.totalorder %s2102_s22, %s2102_s22 }
   0x7   :  { %p2109_p3 = por %p2108_p2, %p2107_p1 }
   0x9   :  { %p2110_p4 = pnand %p2109_p3, %p2103_p0 }
   0xb   :  { %2113 = shalt.err (!%p2110_p4)
}
   0xc   :  { %s2182_s23 = smov 128   ;;  %s2183_s24 = smov 8  }
   0xd   :  { %36 = dma.hbm_to_vmem [thread:$0]  %s2420_s1, 512, %s31_s19, [#allocation7], %s2182_s23, %s2182_s23, %s2183_s24  }
   0xe   :  { %s2122_s27 = scalar_lea.vmem %s19_s21, 256  ;;  %p2127_p6 = scmp.lt.s32.totalorder %s19_s21, %s19_s21 }
   0xf   :  { %p2123_p5 = scmp.ne.s32.totalorder %s19_s21, %s2122_s27  ;;  %p2128_p7 = scmp.lt.s32.totalorder %s2122_s27, %s2122_s27 }
  0x11   :  { %p2129_p8 = por %p2128_p7, %p2127_p6 }
  0x13   :  { %p2130_p9 = pnand %p2129_p8, %p2123_p5 }
  0x15   :  { %2133 = shalt.err (!%p2130_p9)
}
  0x16   :  { %24 = dma.hbm_to_vmem [thread:$0]  %s2419_s0, 256, %s19_s21, [#allocation4], %s2182_s23, %s2182_s23, %s2183_s24  }
  0x17   :  { %s2184_s30 = smov [#allocation8]  }
  0x18   :  { %s44_s6 = sshll.u32 %s2184_s30, 4  ;;  %s45_s6 = int_to_ptr.vmem [resolvable:$true] %s44_s6 }
  0x19   :  { %s2142_s7 = scalar_lea.vmem %s45_s6, 512  ;;  %p2147_p11 = scmp.lt.s32.totalorder %s45_s6, %s45_s6 }
  0x1a   :  { %p2143_p10 = scmp.ne.s32.totalorder %s45_s6, %s2142_s7  ;;  %p2148_p12 = scmp.lt.s32.totalorder %s2142_s7, %s2142_s7 }
  0x1c   :  { %p2149_p13 = por %p2148_p12, %p2147_p11 }
  0x1e   :  { %p2150_p0 = pnand %p2149_p13, %p2143_p10 }
  0x20   :  { %2153 = shalt.err (!%p2150_p0)
}
  0x21   :  { %50 = dma.hbm_to_vmem [thread:$0]  %s2422_s3, 512, %s45_s6, [#allocation7], %s2182_s23, %s2182_s23, %s2183_s24  }
  0x22   :  { %2174 = dma.done.wait [#allocation4], 256  }
  0x23   :  { %2175 = vsyncadd [#allocation4], 4294967040 }
  0x24   :  { %2176 = dma.done.wait [#allocation7], 1024  }
  0x25   :  { %2177 = vsyncadd [#allocation7], 4294966272  ;;  %vm75_vm0 = vcmask 261120   ;;  %v67_v0 = vld [vmem:[#allocation6 + $0x18] sm:$0xff]  ;;  %v66_v1 = vld [vmem:[#allocation6 + $0x10] sm:$0xff]  ;;  %v2185_v7 = vmov 0.0  }
  0x26   :  { %1938 = vmatprep.subr.mxu0 %v67_v0  ;;  %v62_v2 = vld [vmem:[#allocation3] sm:$0xff]  ;;  %v65_v3 = vld [vmem:[#allocation6 + $0x8] sm:$0xff]  ;;  %v64_v4 = vld [vmem:[#allocation6] sm:$0xff]  ;;  %1949 = vmatprep.subr.mxu1 %v2185_v7  ;;  %vm2186_vm1 = vmmov 0   ;;  %s2187_s9 = smov 104   ;;  %s2188_s10 = smov 120  }
  0x27   :  { %1939 = vmatpush3.msra.mxu0 %v67_v0  ;;  %1946 = vmatprep.mubr.msk.f32.mxu0 %vm75_vm0, %v62_v2  ;;  %v63_v5 = vld [vmem:[#allocation3 + $0x8] sm:$0xff]  ;;  %v1860_v8 = vld [vmem:[%s2421_s2] ss:$0 sm:$0xff]  ;;  %s2189_s2 = smov 112   ;;  %s2190_s11 = smov 96   ;;  %vm174_vm2 = vcmask 64512  }
  0x28   :  { %1940 = vmatprep.subr.mxu0 %v66_v1  ;;  %1951 = vmatprep.mubr.msk.f32.mxu1 %vm2186_vm1, %v2185_v7  ;;  %s2191_s12 = smov 64   ;;  %s2192_s15 = smov [#allocation9]  }
  0x29   :  { %1941 = vmatpush3.msra.mxu0 %v66_v1  ;;  %s1847_s16 = sshll.u32 %s2192_s15, 4  ;;  %s1848_s16 = int_to_ptr.vmem [resolvable:$true] %s1847_s16 }
  0x2a   :  { %1942 = vmatprep.subr.mxu0 %v65_v3  ;;  %s2154_s17 = scalar_lea.vmem %s1848_s16, 256  ;;  %p2159_p2 = scmp.lt.s32.totalorder %s1848_s16, %s1848_s16 }
  0x2b   :  { %1943 = vmatpush3.msra.mxu0 %v65_v3  ;;  %p2155_p1 = scmp.ne.s32.totalorder %s1848_s16, %s2154_s17  ;;  %p2160_p3 = scmp.lt.s32.totalorder %s2154_s17, %s2154_s17 }
  0x2c   :  { %1944 = vmatprep.subr.mxu0 %v64_v4 }
  0x2d   :  { %1945 = vmatpush3.msra.mxu0 %v64_v4  ;;  %p2161_p4 = por %p2160_p3, %p2159_p2 }
  0x2e   :  { %1947 = vmatmul.mubr.msk.f32.vlgmr.msra.gmra.mxu0 %vm75_vm0, %v63_v5  ;;  %1964 = vmatprep.subr.mxu0 %v2185_v7 }
  0x2f   :  { %1966 = vmatprep.mubr.msk.f32.mxu0 %vm2186_vm1, %v2185_v7  ;;  %p2162_p5 = pnand %p2161_p4, %p2155_p1 }
  0xee   :  { %v1948_v6 = vpop.f32.mrf.mxu0 }
  0xef   :  { %v2256_v11 = vadd.f32 %v1948_v6, %v1860_v8 }
  0xf0   :  { %v148_v9 = vpop.f32.mrf.mxu0 }
  0xf1   :  { %v2248_v10 = vadd.f32 %v1860_v8, %v148_v9 }
  0xf3   :  { %167 = vrot.lane.b32.xlu1 %v2248_v10, %s2187_s9  ;;  %159 = vrot.lane.b32.xlu0 %v2248_v10, %s2188_s10 }
  0xf7   :  { %161 = vrot.lane.b32.xlu1 %v2256_v11, %s2188_s10  ;;  %163 = vrot.lane.b32.xlu0 %v2248_v10, %s2189_s2 }
  0xfb   :  { %169 = vrot.lane.b32.xlu1 %v2256_v11, %s2187_s9  ;;  %165 = vrot.lane.b32.xlu0 %v2256_v11, %s2189_s2 }
  0xff   :  { %171 = vrot.lane.b32.xlu0 %v2248_v10, %s2190_s11 }
 0x165   :  { %v2263_v12 = vpop.permute.xlu1 %167  ;;  %v2265_v13 = vpop.permute.xlu0 %159 }
 0x166   :  { %247 = vrot.lane.b32.xlu1 %v2265_v13, %s2190_s11 }
 0x169   :  { %v2268_v14 = vpop.permute.xlu0 %163  ;;  %v2272_v15 = vpop.permute.xlu1 %161 }
 0x16a   :  { %397 = vrot.lane.b32.xlu1 %v2263_v12, %s2190_s11  ;;  %322 = vrot.lane.b32.xlu0 %v2268_v14, %s2190_s11 }
 0x16d   :  { %v2274_v16 = vpop.permute.xlu0 %165  ;;  %v2278_v17 = vpop.permute.xlu1 %169 }
 0x16e   :  { %547 = vrot.lane.b32.xlu1 %v2272_v15, %s2190_s11  ;;  %472 = vrot.lane.b32.xlu0 %v2256_v11, %s2190_s11 }
 0x171   :  { %v172_v18 = vpop.permute.xlu0 %171 }
 0x172   :  { %697 = vrot.lane.b32.xlu1 %v2278_v17, %s2190_s11  ;;  %622 = vrot.lane.b32.xlu0 %v2274_v16, %s2190_s11 }
 0x173   :  { %1950 = vmatpush3.msra.mxu1 %v172_v18 }
 0x174   :  { %1952 = vmatmul.mubr.msk.f32.vlgmr.msra.gmra.mxu1 %vm174_vm2, %v2248_v10  ;;  %1954 = vmatprep.subr.mxu1 %v2185_v7 }
 0x175   :  { %1956 = vmatprep.mubr.msk.f32.mxu1 %vm2186_vm1, %v2185_v7 }
 0x1d8   :  { %v248_v19 = vpop.permute.xlu1 %247 }
 0x1d9   :  { %1955 = vmatpush3.msra.mxu1 %v248_v19 }
 0x1da   :  { %1957 = vmatmul.mubr.msk.f32.vlgmr.msra.gmra.mxu1 %vm174_vm2, %v2265_v13  ;;  %1959 = vmatprep.subr.mxu1 %v2185_v7 }
 0x1db   :  { %1961 = vmatprep.mubr.msk.f32.mxu1 %vm2186_vm1, %v2185_v7 }
 0x1dc   :  { %v398_v20 = vpop.permute.xlu1 %397  ;;  %v323_v21 = vpop.permute.xlu0 %322 }
 0x1dd   :  { %1960 = vmatpush3.msra.mxu1 %v323_v21  ;;  %1965 = vmatpush3.msra.mxu0 %v398_v20 }
 0x1de   :  { %1962 = vmatmul.mubr.msk.f32.vlgmr.msra.gmra.mxu1 %vm174_vm2, %v2268_v14  ;;  %1967 = vmatmul.mubr.msk.f32.vlgmr.msra.gmra.mxu0 %vm174_vm2, %v2263_v12 }
 0x1df   :  { %1974 = vmatprep.subr.mxu0 %v2185_v7  ;;  %1969 = vmatprep.subr.mxu1 %v2185_v7 }
 0x1e0   :  { %v548_v22 = vpop.permute.xlu1 %547  ;;  %v473_v23 = vpop.permute.xlu0 %472  ;;  %1971 = vmatprep.mubr.msk.f32.mxu1 %vm2186_vm1, %v2185_v7  ;;  %1976 = vmatprep.mubr.msk.f32.mxu0 %vm2186_vm1, %v2185_v7 }
 0x1e1   :  { %1970 = vmatpush3.msra.mxu1 %v473_v23  ;;  %1975 = vmatpush3.msra.mxu0 %v548_v22 }
 0x1e2   :  { %1972 = vmatmul.mubr.msk.f32.vlgmr.msra.gmra.mxu1 %vm174_vm2, %v2256_v11  ;;  %1977 = vmatmul.mubr.msk.f32.vlgmr.msra.gmra.mxu0 %vm174_vm2, %v2272_v15 }
 0x1e3   :  { %1984 = vmatprep.subr.mxu0 %v2185_v7  ;;  %1979 = vmatprep.subr.mxu1 %v2185_v7 }
 0x1e4   :  { %v698_v24 = vpop.permute.xlu1 %697  ;;  %v623_v25 = vpop.permute.xlu0 %622  ;;  %1981 = vmatprep.mubr.msk.f32.mxu1 %vm2186_vm1, %v2185_v7  ;;  %1986 = vmatprep.mubr.msk.f32.mxu0 %vm2186_vm1, %v2185_v7 }
 0x1e5   :  { %1980 = vmatpush3.msra.mxu1 %v623_v25  ;;  %1985 = vmatpush3.msra.mxu0 %v698_v24 }
 0x1e6   :  { %1982 = vmatmul.mubr.msk.f32.vlgmr.msra.gmra.mxu1 %vm174_vm2, %v2274_v16  ;;  %1987 = vmatmul.mubr.msk.f32.vlgmr.msra.gmra.mxu0 %vm174_vm2, %v2278_v17 }
 0x1e7   :  { %1989 = vmatprep.subr.mxu1 %v2185_v7  ;;  %1994 = vmatprep.subr.mxu0 %v2185_v7 }
 0x1e8   :  { %1991 = vmatprep.mubr.msk.f32.mxu1 %vm2186_vm1, %v2185_v7  ;;  %1996 = vmatprep.mubr.msk.f32.mxu0 %vm2186_vm1, %v2185_v7 }
 0x234   :  { %v243_v26 = vpop.f32.mrf.mxu1 }
 0x235   :  { %v772_v27 = vmul.f32 0.35355338, %v243_v26 }
 0x236   :  { %v1953_v28 = vpop.f32.mrf.mxu1 }
 0x237   :  { %v780_v29 = vsel %vm174_vm2, %v772_v27, -inf }
 0x238   :  { %781 = vmax.xlane.f32.xlu0 %v780_v29 }
 0x29a   :  { %v318_v30 = vpop.f32.mrf.mxu1 }
 0x29b   :  { %v773_v31 = vmul.f32 0.35355338, %v318_v30 }
 0x29c   :  { %v1958_v32 = vpop.f32.mrf.mxu1 }
 0x29d   :  { %v783_v33 = vsel %vm174_vm2, %v773_v31, -inf }
 0x29e   :  { %v468_v34 = vpop.f32.mrf.mxu0  ;;  %784 = vmax.xlane.f32.xlu1 %v783_v33  ;;  %v393_v35 = vpop.f32.mrf.mxu1 }
 0x29f   :  { %v775_v36 = vmul.f32 0.35355338, %v468_v34  ;;  %v774_v39 = vmul.f32 0.35355338, %v393_v35 }
 0x2a0   :  { %v1963_v37 = vpop.f32.mrf.mxu1  ;;  %v1968_v38 = vpop.f32.mrf.mxu0 }
 0x2a1   :  { %v789_v40 = vsel %vm174_vm2, %v775_v36, -inf  ;;  %v786_v47 = vsel %vm174_vm2, %v774_v39, -inf }
 0x2a2   :  { %v618_v41 = vpop.f32.mrf.mxu0  ;;  %790 = vmax.xlane.f32.xlu0 %v789_v40  ;;  %v543_v42 = vpop.f32.mrf.mxu1 }
 0x2a3   :  { %v776_v43 = vmul.f32 0.35355338, %v543_v42  ;;  %v777_v46 = vmul.f32 0.35355338, %v618_v41 }
 0x2a4   :  { %v1973_v44 = vpop.f32.mrf.mxu1  ;;  %v1978_v45 = vpop.f32.mrf.mxu0 }
 0x2a5   :  { %v792_v48 = vsel %vm174_vm2, %v776_v43, -inf  ;;  %v795_v55 = vsel %vm174_vm2, %v777_v46, -inf }
 0x2a6   :  { %v768_v49 = vpop.f32.mrf.mxu0  ;;  %787 = vmax.xlane.f32.xlu0 %v786_v47  ;;  %793 = vmax.xlane.f32.xlu1 %v792_v48  ;;  %v693_v50 = vpop.f32.mrf.mxu1 }
 0x2a7   :  { %v778_v51 = vmul.f32 0.35355338, %v693_v50  ;;  %v779_v54 = vmul.f32 0.35355338, %v768_v49 }
 0x2a8   :  { %v1983_v52 = vpop.f32.mrf.mxu1  ;;  %v1988_v53 = vpop.f32.mrf.mxu0 }
 0x2a9   :  { %v798_v56 = vsel %vm174_vm2, %v778_v51, -inf  ;;  %v801_v57 = vsel %vm174_vm2, %v779_v54, -inf }
 0x2aa   :  { %796 = vmax.xlane.f32.xlu0 %v795_v55  ;;  %799 = vmax.xlane.f32.xlu1 %v798_v56 }
 0x2ae   :  { %802 = vmax.xlane.f32.xlu0 %v801_v57 }
 0x2bb   :  { %868 = vrot.lane.b32.xlu1 %v2248_v10, %s2191_s12 }
 0x2bf   :  { %1020 = vrot.lane.b32.xlu1 %v2268_v14, %s2191_s12 }
 0x2c1   :  { %v782_v58 = vpop.xlane.xlu0 %781 }
 0x2c2   :  { %v804_v59 = vsub.f32 %v772_v27, %v782_v58 }
 0x2c3   :  { %1096 = vrot.lane.b32.xlu1 %v2263_v12, %s2191_s12 }
 0x2c4   :  { %944 = vrot.lane.b32.xlu0 %v2265_v13, %s2191_s12  ;;  %v812_v60 = vmul.f32 1.442695, %v804_v59 }
 0x2c6   :  { %2062 = vpow2.f32 %v812_v60 }
 0x2c7   :  { %1248 = vrot.lane.b32.xlu1 %v2272_v15, %s2191_s12 }
 0x2c8   :  { %1172 = vrot.lane.b32.xlu0 %v2256_v11, %s2191_s12 }
 0x2d3   :  { %v2342_v61 = vpop.eup %2062 }
 0x2d4   :  { %v828_v62 = vsel %vm174_vm2, %v2342_v61, 0.0 }
 0x2eb   :  { %829 = vadd.xlane.f32.xlu1 %v828_v62 }
 0x327   :  { %v785_v63 = vpop.xlane.xlu1 %784 }
 0x328   :  { %v805_v0 = vsub.f32 %v773_v31, %v785_v63 }
 0x32a   :  { %v814_v1 = vmul.f32 1.442695, %v805_v0 }
 0x32b   :  { %v791_v2 = vpop.xlane.xlu0 %790 }
 0x32c   :  { %2064 = vpow2.f32 %v814_v1  ;;  %v807_v3 = vsub.f32 %v775_v36, %v791_v2 }
 0x32e   :  { %v818_v4 = vmul.f32 1.442695, %v807_v3  ;;  %v1492_v3 = vld [vmem:[#allocation8 + $0x8] sm:$0xff] }
 0x32f   :  { %v794_v5 = vpop.xlane.xlu1 %793  ;;  %v788_v6 = vpop.xlane.xlu0 %787 }
 0x330   :  { %2066 = vpow2.f32 %v818_v4  ;;  %v808_v8 = vsub.f32 %v776_v43, %v794_v5  ;;  %v806_v9 = vsub.f32 %v774_v39, %v788_v6  ;;  %v1487_v4 = vld [vmem:[#allocation8] sm:$0xff]  ;;  %v1659_v5 = vld [vmem:[#allocation8 + $0x10] sm:$0xff]  ;;  %v1747_v6 = vld [vmem:[#allocation8 + $0x18] sm:$0xff] }
 0x332   :  { %v816_v10 = vmul.f32 1.442695, %v806_v9  ;;  %v820_v11 = vmul.f32 1.442695, %v808_v8 }
 0x333   :  { %v800_v12 = vpop.xlane.xlu1 %799  ;;  %v797_v13 = vpop.xlane.xlu0 %796 }
 0x334   :  { %v810_v14 = vsub.f32 %v778_v51, %v800_v12  ;;  %v809_v15 = vsub.f32 %v777_v46, %v797_v13  ;;  %2068 = vpow2.f32 %v816_v10 }
 0x335   :  { %2070 = vpow2.f32 %v820_v11 }
 0x336   :  { %v822_v18 = vmul.f32 1.442695, %v809_v15  ;;  %v824_v19 = vmul.f32 1.442695, %v810_v14 }
 0x337   :  { %v869_v20 = vpop.permute.xlu1 %868  ;;  %v803_v21 = vpop.xlane.xlu0 %802 }
 0x338   :  { %v811_v22 = vsub.f32 %v779_v54, %v803_v21  ;;  %1990 = vmatpush3.msra.mxu1 %v869_v20  ;;  %2072 = vpow2.f32 %v822_v18 }
 0x339   :  { %v2065_v23 = vpop.eup %2064  ;;  %1999 = vmatprep.subr.mxu1 %v2185_v7  ;;  %2074 = vpow2.f32 %v824_v19 }
 0x33a   :  { %v826_v24 = vmul.f32 1.442695, %v811_v22  ;;  %v831_v25 = vsel %vm174_vm2, %v2065_v23, 0.0 }
 0x33b   :  { %832 = vadd.xlane.f32.xlu0 %v831_v25  ;;  %v945_v26 = vpop.permute.xlu0 %944  ;;  %v1021_v39 = vpop.permute.xlu1 %1020 }
 0x33c   :  { %2076 = vpow2.f32 %v826_v24  ;;  %1995 = vmatpush3.msra.mxu0 %v945_v26 }
 0x33d   :  { %v2067_v27 = vpop.eup %2066  ;;  %2004 = vmatprep.subr.mxu0 %v2185_v7 }
 0x33e   :  { %v837_v28 = vsel %vm174_vm2, %v2067_v27, 0.0 }
 0x33f   :  { %838 = vadd.xlane.f32.xlu0 %v837_v28  ;;  %v1097_v40 = vpop.permute.xlu1 %1096 }
 0x341   :  { %v2069_v29 = vpop.eup %2068 }
 0x342   :  { %v834_v30 = vsel %vm174_vm2, %v2069_v29, 0.0  ;;  %v2071_v31 = vpop.eup %2070 }
 0x343   :  { %835 = vadd.xlane.f32.xlu1 %v834_v30  ;;  %v840_v33 = vsel %vm174_vm2, %v2071_v31, 0.0  ;;  %v1249_v41 = vpop.permute.xlu1 %1248 }
 0x345   :  { %v2073_v32 = vpop.eup %2072 }
 0x346   :  { %v843_v34 = vsel %vm174_vm2, %v2073_v32, 0.0  ;;  %v2353_v35 = vpop.eup %2074 }
 0x347   :  { %841 = vadd.xlane.f32.xlu1 %v840_v33  ;;  %844 = vadd.xlane.f32.xlu0 %v843_v34  ;;  %v846_v38 = vsel %vm174_vm2, %v2353_v35, 0.0 }
 0x349   :  { %v2355_v36 = vpop.eup %2076 }
 0x34a   :  { %v849_v37 = vsel %vm174_vm2, %v2355_v36, 0.0 }
 0x34b   :  { %847 = vadd.xlane.f32.xlu1 %v846_v38  ;;  %850 = vadd.xlane.f32.xlu0 %v849_v37 }
 0x35c   :  { %1400 = vrot.lane.b32.xlu1 %v2278_v17, %s2191_s12  ;;  %v1173_v17 = vpop.permute.xlu0 %1172 }
 0x361   :  { %1324 = vrot.lane.b32.xlu0 %v2274_v16, %s2191_s12 }
 0x374   :  { %v830_v42 = vpop.xlane.xlu1 %829 }
 0x375   :  { %2078 = vrcp.f32 %v830_v42  ;;  %v1887_v42 = vld [vmem:[%s2423_s4] ss:$0 sm:$0xff] }
 0x382   :  { %v2079_v43 = vpop.eup %2078 }
 0x383   :  { %v853_v44 = vmul.f32 %v2079_v43, %v2342_v61 }
 0x385   :  { %1992 = vmatmul.mubr.msk.f32.vlgmr.msra.gmra.mxu1 %vm174_vm2, %v853_v44 }
 0x386   :  { %2000 = vmatpush3.msra.mxu1 %v1021_v39  ;;  %2001 = vmatprep.mubr.msk.f32.mxu1 %vm2186_vm1, %v2185_v7 }
 0x387   :  { %2009 = vmatprep.subr.mxu1 %v2185_v7 }
 0x3c4   :  { %v833_v45 = vpop.xlane.xlu0 %832 }
 0x3c5   :  { %2080 = vrcp.f32 %v833_v45 }
 0x3c8   :  { %v839_v16 = vpop.xlane.xlu0 %838 }
 0x3c9   :  { %2082 = vrcp.f32 %v839_v16 }
 0x3cc   :  { %v836_v46 = vpop.xlane.xlu1 %835 }
 0x3cd   :  { %2084 = vrcp.f32 %v836_v46 }
 0x3d0   :  { %v842_v47 = vpop.xlane.xlu1 %841  ;;  %v845_v48 = vpop.xlane.xlu0 %844 }
 0x3d1   :  { %2086 = vrcp.f32 %v842_v47 }
 0x3d2   :  { %v2081_v49 = vpop.eup %2080  ;;  %2088 = vrcp.f32 %v845_v48 }
 0x3d3   :  { %v855_v50 = vmul.f32 %v2081_v49, %v2065_v23 }
 0x3d4   :  { %v848_v51 = vpop.xlane.xlu1 %847  ;;  %v851_v52 = vpop.xlane.xlu0 %850 }
 0x3d5   :  { %1997 = vmatmul.mubr.msk.f32.vlgmr.msra.gmra.mxu0 %vm174_vm2, %v855_v50  ;;  %2090 = vrcp.f32 %v848_v51 }
 0x3d6   :  { %v2083_v53 = vpop.eup %2082  ;;  %2005 = vmatpush3.msra.mxu0 %v1097_v40  ;;  %2006 = vmatprep.mubr.msk.f32.mxu0 %vm2186_vm1, %v2185_v7  ;;  %2092 = vrcp.f32 %v851_v52 }
 0x3d7   :  { %2014 = vmatprep.subr.mxu0 %v2185_v7  ;;  %v859_v54 = vmul.f32 %v2083_v53, %v2067_v27 }
 0x3d8   :  { %v1325_v61 = vpop.permute.xlu0 %1324  ;;  %v1401_v63 = vpop.permute.xlu1 %1400 }
 0x3d9   :  { %2007 = vmatmul.mubr.msk.f32.vlgmr.msra.gmra.mxu0 %vm174_vm2, %v859_v54 }
 0x3da   :  { %2015 = vmatpush3.msra.mxu0 %v1249_v41  ;;  %2016 = vmatprep.mubr.msk.f32.mxu0 %vm2186_vm1, %v2185_v7  ;;  %v2085_v55 = vpop.eup %2084 }
 0x3db   :  { %2024 = vmatprep.subr.mxu0 %v2185_v7  ;;  %v857_v56 = vmul.f32 %v2085_v55, %v2069_v29 }
 0x3dd   :  { %2002 = vmatmul.mubr.msk.f32.vlgmr.msra.gmra.mxu1 %vm174_vm2, %v857_v56 }
 0x3de   :  { %v2087_v57 = vpop.eup %2086  ;;  %2010 = vmatpush3.msra.mxu1 %v1173_v17  ;;  %2011 = vmatprep.mubr.msk.f32.mxu1 %vm2186_vm1, %v2185_v7 }
 0x3df   :  { %v2089_v58 = vpop.eup %2088  ;;  %2019 = vmatprep.subr.mxu1 %v2185_v7  ;;  %v861_v59 = vmul.f32 %v2087_v57, %v2071_v31 }
 0x3e0   :  { %v863_v60 = vmul.f32 %v2089_v58, %v2073_v32 }
 0x3e1   :  { %2012 = vmatmul.mubr.msk.f32.vlgmr.msra.gmra.mxu1 %vm174_vm2, %v861_v59 }
 0x3e2   :  { %v2091_v62 = vpop.eup %2090  ;;  %2017 = vmatmul.mubr.msk.f32.vlgmr.msra.gmra.mxu0 %vm174_vm2, %v863_v60  ;;  %2020 = vmatpush3.msra.mxu1 %v1325_v61 }
 0x3e3   :  { %v2093_v0 = vpop.eup %2092  ;;  %2025 = vmatpush3.msra.mxu0 %v1401_v63  ;;  %2021 = vmatprep.mubr.msk.f32.mxu1 %vm2186_vm1, %v2185_v7  ;;  %v865_v1 = vmul.f32 %v2091_v62, %v2353_v35 }
 0x3e4   :  { %2026 = vmatprep.mubr.msk.f32.mxu0 %vm2186_vm1, %v2185_v7  ;;  %v867_v2 = vmul.f32 %v2093_v0, %v2355_v36  ;;  %2029 = vmatprep.subr.mxu1 %v1492_v3 }
 0x3e5   :  { %2022 = vmatmul.mubr.msk.f32.vlgmr.msra.gmra.mxu1 %vm174_vm2, %v865_v1  ;;  %2034 = vmatprep.subr.mxu0 %v1487_v4 }
 0x3e6   :  { %2027 = vmatmul.mubr.msk.f32.vlgmr.msra.gmra.mxu0 %vm174_vm2, %v867_v2  ;;  %2030 = vmatpush3.msra.mxu1 %v1492_v3 }
 0x3e7   :  { %2035 = vmatpush3.msra.mxu0 %v1487_v4  ;;  %2039 = vmatprep.subr.mxu1 %v1659_v5 }
 0x3e8   :  { %2044 = vmatprep.subr.mxu0 %v1747_v6 }
 0x445   :  { %v940_v8 = vpop.f32.mrf.mxu1 }
 0x446   :  { %1476 = vst.msk [vmem:[#allocation2] sm:$0xff] %vm174_vm2, %v940_v8 }
 0x447   :  { %v1993_v7 = vpop.f32.mrf.mxu1 }
 0x495   :  { %v1016_v9 = vpop.f32.mrf.mxu0 }
 0x496   :  { %1477 = vst.msk [vmem:[#allocation2 + $0x8] sm:$0xff] %vm174_vm2, %v1016_v9 }
 0x497   :  { %v1998_v10 = vpop.f32.mrf.mxu0 }
 0x499   :  { %v1168_v11 = vpop.f32.mrf.mxu0 }
 0x49a   :  { %1479 = vst.msk [vmem:[#allocation2 + $0x18] sm:$0xff] %vm174_vm2, %v1168_v11 }
 0x49b   :  { %v2008_v12 = vpop.f32.mrf.mxu0 }
 0x49d   :  { %v1092_v13 = vpop.f32.mrf.mxu1 }
 0x49e   :  { %1478 = vst.msk [vmem:[#allocation2 + $0x10] sm:$0xff] %vm174_vm2, %v1092_v13 }
 0x49f   :  { %v2003_v14 = vpop.f32.mrf.mxu1 }
 0x4a1   :  { %v1244_v15 = vpop.f32.mrf.mxu1 }
 0x4a2   :  { %1480 = vst.msk [vmem:[#allocation2 + $0x20] sm:$0xff] %vm174_vm2, %v1244_v15  ;;  %v1320_v18 = vpop.f32.mrf.mxu0 }
 0x4a3   :  { %1481 = vst.msk [vmem:[#allocation2 + $0x28] sm:$0xff] %vm174_vm2, %v1320_v18  ;;  %v2013_v19 = vpop.f32.mrf.mxu1 }
 0x4a4   :  { %v2018_v20 = vpop.f32.mrf.mxu0 }
 0x4a5   :  { %v1396_v21 = vpop.f32.mrf.mxu1  ;;  %v1489_v22 = vld [vmem:[#allocation2 + $0x1] ss:$4 sm:$0xff]  ;;  %v1484_v23 = vld [vmem:[#allocation2] ss:$4 sm:$0xff]  ;;  %v1656_v29 = vld [vmem:[#allocation2 + $0x2] ss:$4 sm:$0xff] }
 0x4a6   :  { %1482 = vst.msk [vmem:[#allocation2 + $0x30] sm:$0xff] %vm174_vm2, %v1396_v21  ;;  %v1472_v24 = vpop.f32.mrf.mxu0  ;;  %2031 = vmatprep.mubr.msk.f32.mxu1 %vm174_vm2, %v1489_v22  ;;  %2036 = vmatprep.mubr.msk.f32.mxu0 %vm174_vm2, %v1484_v23  ;;  %v1744_v30 = vld [vmem:[#allocation2 + $0x3] ss:$4 sm:$0xff] }
 0x4a7   :  { %1483 = vst.msk [vmem:[#allocation2 + $0x38] sm:$0xff] %vm174_vm2, %v1472_v24  ;;  %v2023_v25 = vpop.f32.mrf.mxu1 }
 0x4a8   :  { %v2028_v26 = vpop.f32.mrf.mxu0 }
 0x4ae   :  { %v1491_v27 = vld [vmem:[#allocation2 + $0x21] ss:$4 sm:$0xff]  ;;  %v1486_v28 = vld [vmem:[#allocation2 + $0x20] ss:$4 sm:$0xff]  ;;  %v1658_v31 = vld [vmem:[#allocation2 + $0x22] ss:$4 sm:$0xff] }
 0x4af   :  { %2032 = vmatmul.mubr.msk.f32.vlgmr.msra.gmra.mxu1 %vm174_vm2, %v1491_v27  ;;  %2037 = vmatmul.mubr.msk.f32.vlgmr.msra.gmra.mxu0 %vm174_vm2, %v1486_v28  ;;  %v1746_v32 = vld [vmem:[#allocation2 + $0x23] ss:$4 sm:$0xff] }
 0x4b0   :  { %2041 = vmatprep.mubr.msk.f32.mxu1 %vm174_vm2, %v1656_v29  ;;  %2046 = vmatprep.mubr.msk.f32.mxu0 %vm174_vm2, %v1744_v30 }
 0x4b1   :  { %2040 = vmatpush3.msra.mxu1 %v1659_v5  ;;  %2045 = vmatpush3.msra.mxu0 %v1747_v6 }
 0x4b3   :  { %2042 = vmatmul.mubr.msk.f32.vlgmr.msra.gmra.mxu1 %vm174_vm2, %v1658_v31  ;;  %2047 = vmatmul.mubr.msk.f32.vlgmr.msra.gmra.mxu0 %vm174_vm2, %v1746_v32 }
 0x56f   :  { %v2033_v33 = vpop.f32.mrf.mxu1  ;;  %v2038_v34 = vpop.f32.mrf.mxu0 }
 0x570   :  { %v1652_v37 = vadd.f32 %v2038_v34, %v2033_v33 }
 0x571   :  { %v1565_v35 = vpop.f32.mrf.mxu1  ;;  %v1646_v36 = vpop.f32.mrf.mxu0 }
 0x572   :  { %v1647_v40 = vadd.f32 %v1646_v36, %v1565_v35 }
 0x573   :  { %v2043_v38 = vpop.f32.mrf.mxu1  ;;  %v2048_v39 = vpop.f32.mrf.mxu0 }
 0x574   :  { %v1742_v41 = vadd.f32 %v2043_v38, %v1652_v37 }
 0x575   :  { %v1732_v43 = vpop.f32.mrf.mxu1  ;;  %v1820_v45 = vpop.f32.mrf.mxu0 }
 0x576   :  { %v1830_v44 = vadd.f32 %v2048_v39, %v1742_v41  ;;  %v1741_v17 = vadd.f32 %v1732_v43, %v1647_v40 }
 0x578   :  { %v1839_v16 = vadd.f32 %v1887_v42, %v1830_v44  ;;  %v1829_v46 = vadd.f32 %v1820_v45, %v1741_v17 }
 0x57a   :  { %1841 = vst.msk [vmem:[#allocation9 + $0x8] sm:$0xff] %vm75_vm0, %v1839_v16  ;;  %v1838_v47 = vadd.f32 %v1887_v42, %v1829_v46 }
 0x57c   :  { %1840 = vst.msk [vmem:[#allocation9] sm:$0xff] %vm75_vm0, %v1838_v47 }
 0x57d   :  { %2165 = shalt.err (!%p2162_p5)
}
 0x57e   :  { %1853 = dma.vmem_to_hbm [thread:$0]  %s1848_s16, 256, %s2424_s5, [#allocation5], %s2182_s23, %s2182_s23, %s2183_s24  }
 0x57f   :  { %2178 = dma.done.wait [#allocation5], 256  }
 0x580   :  { %2179 = vsyncadd [#allocation5], 4294967040 }
 0x581   :  { %1857 = vsyncpa [#allocation4], 1 }
 0x582   :  { %1858 = vsyncpa [#allocation7], 1 }
 0x583   :  { %1859 = vsyncpa [#allocation5], 1 }

</bundles_post_ra>
